<compile_context>
chip_gen: v7x
topology: tpu7x:2x2x1
jax: 0.10.0
libtpu: 0.0.40
codegen_flags: <defaults>
</compile_context>

<pallas_src>
import jax
import jax.numpy as jnp
from jax.experimental import pallas as pl
from jax.experimental.pallas import tpu as pltpu


def _make_fused_ce_kernel(n_rows, tile):
    """Build the per-tile kernel closed over static row count / tile size."""

    def kernel(x_ref, h_ref, meta_ref, out_ref):
        """Per-tile fused cross-entropy partial sums.

        x_ref, h_ref : (tile, C) logits tiles (native dtype; cast to f32 here)
        meta_ref     : (tile, 1) int32, meta = y<<2 | V0 | V1<<1
        out_ref      : (8, 128) f32; row 0 holds the lane-dense partial sums:
            lane 0: sum(V0 * ce_x)     lane 1: sum(V0)
            lane 2: sum(V1 * ce_h)     lane 3: sum(V1)
            lane 4: sum(valid * ce_x)  (for the V1-all-zero branch)
        """
        x = x_ref[...].astype(jnp.float32)
        h = h_ref[...].astype(jnp.float32)
        meta = meta_ref[...]

        # valid-row mask from static N (edge blocks past the array end carry
        # unspecified data; everything below is gated by this mask).
        row0 = pl.program_id(0) * tile
        ridx = row0 + jax.lax.broadcasted_iota(jnp.int32, (tile, 1), 0)
        vld_b = ridx < n_rows
        vld = vld_b.astype(jnp.float32)

        y = meta >> 2
        m0 = (meta & 1).astype(jnp.float32) * vld
        m1 = ((meta >> 1) & 1).astype(jnp.float32) * vld

        # zero out garbage logits in out-of-range rows so exp/log stay finite
        x = jnp.where(vld_b, x, 0.0)
        h = jnp.where(vld_b, h, 0.0)

        # one-hot gather of the target logit (VPU-friendly, no dynamic
        # gather); shared between the two CE passes.
        cls = jax.lax.broadcasted_iota(jnp.int32, x.shape, 1)
        onehot = (cls == y).astype(jnp.float32)

        def row_ce(logits):
            row_max = jnp.max(logits, axis=-1, keepdims=True)
            lse = row_max + jnp.log(
                jnp.sum(jnp.exp(logits - row_max), axis=-1, keepdims=True))
            tgt = jnp.sum(logits * onehot, axis=-1, keepdims=True)
            return lse - tgt  # (tile, 1) per-row CE

        ce_x = row_ce(x)
        ce_h = row_ce(h)

        sums = [
            jnp.sum(ce_x * m0),   # lane 0
            jnp.sum(m0),          # lane 1
            jnp.sum(ce_h * m1),   # lane 2
            jnp.sum(m1),          # lane 3
            jnp.sum(ce_x * vld),  # lane 4
        ]

        lane = jax.lax.broadcasted_iota(jnp.int32, (8, 128), 1)
        sub = jax.lax.broadcasted_iota(jnp.int32, (8, 128), 0)
        out = jnp.zeros((8, 128), jnp.float32)
        for k, v in enumerate(sums):
            out = out + jnp.where((sub == 0) & (lane == k), v, 0.0)
        out_ref[...] = out

    return kernel


def _round_up(v, m):
    return ((v + m - 1) // m) * m


def _pick_tile(n, c, itemsize, max_tile=2048):
    """Largest row tile s.t. double-buffered inputs stay ~16 MiB."""
    budget = 16 * 1024 * 1024
    # 2 logits inputs x 2 pipeline buffers, plus the meta column which is
    # lane-padded to 128 in VMEM (512 B/row x 2 buffers).
    per_row = 4 * c * itemsize + 1024
    tile = (budget // max(per_row, 1)) // 8 * 8
    tile = max(8, min(max_tile, tile))
    n8 = _round_up(n, 8)
    return n8 if tile >= n8 else tile


def fused_ce_partial_sums(x, h_pmt, y, v0, v1, *, max_tile=2048):
    """Returns a (128,) vector; lanes 0..4 hold the five global partial sums."""
    N, C = x.shape
    itemsize = jnp.dtype(x.dtype).itemsize
    tile = _pick_tile(N, C, itemsize, max_tile)
    num_tiles = pl.cdiv(N, tile)

    # pack targets and both row masks into one int32 side-channel column
    meta = ((y.astype(jnp.int32) << 2)
            | v0.astype(jnp.int32)
            | (v1.astype(jnp.int32) << 1)).reshape(N, 1)

    partials = pl.pallas_call(
        _make_fused_ce_kernel(N, tile),
        out_shape=jax.ShapeDtypeStruct((num_tiles * 8, 128), jnp.float32),
        grid_spec=pltpu.PrefetchScalarGridSpec(
            num_scalar_prefetch=0,
            grid=(num_tiles,),
            in_specs=[
                pl.BlockSpec((tile, C), lambda i: (i, 0)),  # x logits (native dtype)
                pl.BlockSpec((tile, C), lambda i: (i, 0)),  # h_pmt logits
                pl.BlockSpec((tile, 1), lambda i: (i, 0)),  # packed meta
            ],
            out_specs=pl.BlockSpec((8, 128), lambda i: (i, 0)),
        ),
        compiler_params=pltpu.CompilerParams(
            dimension_semantics=("parallel",),       # no carried accumulator
            vmem_limit_bytes=48 * 1024 * 1024,       # headroom for big tiles
        ),
    )(x, h_pmt, meta)

    return jnp.sum(partials, axis=0)  # tiny (num_tiles*8, 128) reduction


def total_loss(x, h_pmt, l_ort, l_pol, y, V1, V0, *, beta=0.15, gamma=0.025,
               max_tile=2048):
    """Pallas-backed equivalent of TotalLoss.forward.

    x, h_pmt : (N, C) logits (f32 or bf16)
    y        : (N,)   int class indices
    V0, V1   : (N,)   boolean row masks
    l_ort, l_pol : scalars
    """
    sums = fused_ce_partial_sums(x, h_pmt, y, V0, V1, max_tile=max_tile)
    s_ce_x_v0, s_v0, s_ce_h_v1, s_v1, s_ce_x_full = (
        sums[0], sums[1], sums[2], sums[3], sums[4])

    # mean CE over selected rows (F.cross_entropy default reduction='mean')
    # TODO(synk): PyTorch returns NaN for an empty selection (e.g. V1 nonzero
    # but V0 empty); we clamp that denominator to 1 and return 0 for the term.
    ce_x_v0 = s_ce_x_v0 / jnp.maximum(s_v0, 1.0)
    ce_h_v1 = s_ce_h_v1 / jnp.maximum(s_v1, 1.0)
    ce_x_full = s_ce_x_full / jnp.float32(x.shape[0])

    # reuse the in-kernel sum(V1) instead of recomputing it in the wrapper
    l_mov = jnp.where(s_v1 != 0.0, ce_x_v0 + ce_h_v1, ce_x_full)
    return l_mov + beta * l_ort + gamma * l_pol


def _reference_total_loss(x, h_pmt, l_ort, l_pol, y, V1, V0,
                          beta=0.15, gamma=0.025):
    """Pure-JAX reference mirroring the PyTorch forward (for verification)."""
    def ce_mean(logits, tgt, mask):
        logp = jax.nn.log_softmax(logits.astype(jnp.float32), axis=-1)
        nll = -jnp.take_along_axis(logp, tgt[:, None], axis=-1)[:, 0]
        return jnp.sum(nll * mask) / jnp.maximum(jnp.sum(mask), 1.0)

    full_mask = jnp.ones_like(y, dtype=jnp.float32)
    if float(jnp.sum(V1.astype(jnp.float32))) != 0.0:
        l_mov = (ce_mean(x, y, V0.astype(jnp.float32))
                 + ce_mean(h_pmt, y, V1.astype(jnp.float32)))
    else:
        l_mov = ce_mean(x, y, full_mask)
    return l_mov + beta * l_ort + gamma * l_pol


if __name__ == "__main__":
    key = jax.random.PRNGKey(0)
    N, C = 16, 32  # batch of 16 samples, 32 classes

    k1, k2, k3, k4, k5 = jax.random.split(key, 5)
    x = jax.random.normal(k1, (N, C), dtype=jnp.float32)
    h_pmt = jax.random.normal(k2, (N, C), dtype=jnp.float32)
    y = jax.random.randint(k3, (N,), 0, C, dtype=jnp.int32)
    l_ort = jax.random.normal(k4, (), dtype=jnp.float32)
    l_pol = jax.random.normal(k5, (), dtype=jnp.float32)

    idx = jnp.arange(N)
    V0 = (idx % 2 == 0)
    V1 = (idx % 2 == 1)

    # branch 1: V1 has nonzero entries
    out = jax.block_until_ready(total_loss(x, h_pmt, l_ort, l_pol, y, V1, V0))
    ref = _reference_total_loss(x, h_pmt, l_ort, l_pol, y, V1, V0)
    assert jnp.allclose(out, ref, rtol=1e-5, atol=1e-5), (out, ref)

    # branch 2: V1 all zero -> full-batch CE on x
    V1z = jnp.zeros((N,), dtype=bool)
    out2 = jax.block_until_ready(total_loss(x, h_pmt, l_ort, l_pol, y, V1z, V0))
    ref2 = _reference_total_loss(x, h_pmt, l_ort, l_pol, y, V1z, V0)
    assert jnp.allclose(out2, ref2, rtol=1e-5, atol=1e-5), (out2, ref2)

    # N not a multiple of 8: exercises the in-kernel edge-row masking
    Np = 13
    xp, hp, yp = x[:Np], h_pmt[:Np], y[:Np]
    V0p, V1p = V0[:Np], V1[:Np]
    out3 = jax.block_until_ready(total_loss(xp, hp, l_ort, l_pol, yp, V1p, V0p))
    ref3 = _reference_total_loss(xp, hp, l_ort, l_pol, yp, V1p, V0p)
    assert jnp.allclose(out3, ref3, rtol=1e-5, atol=1e-5), (out3, ref3)
    out4 = jax.block_until_ready(
        total_loss(xp, hp, l_ort, l_pol, yp, jnp.zeros((Np,), bool), V0p))
    ref4 = _reference_total_loss(xp, hp, l_ort, l_pol, yp,
                                 jnp.zeros((Np,), bool), V0p)
    assert jnp.allclose(out4, ref4, rtol=1e-5, atol=1e-5), (out4, ref4)

    # multi-tile grid + ragged last tile (forced small tile): N=20, tile=8
    Nm = 20
    km1, km2, km3 = jax.random.split(k5, 3)
    xm = jax.random.normal(km1, (Nm, C), dtype=jnp.float32)
    hm = jax.random.normal(km2, (Nm, C), dtype=jnp.float32)
    ym = jax.random.randint(km3, (Nm,), 0, C, dtype=jnp.int32)
    idx_m = jnp.arange(Nm)
    V0m = (idx_m % 3 == 0)
    V1m = (idx_m % 3 == 1)
    out5 = jax.block_until_ready(
        total_loss(xm, hm, l_ort, l_pol, ym, V1m, V0m, max_tile=8))
    ref5 = _reference_total_loss(xm, hm, l_ort, l_pol, ym, V1m, V0m)
    assert jnp.allclose(out5, ref5, rtol=1e-5, atol=1e-5), (out5, ref5)

    print("KERNEL_OK")
</pallas_src>

<mosaic_0001>
module attributes {stable_mosaic.version = 11 : i64} {
  func.func @kernel(%arg0: i32, %arg1: memref<16x32xf32, #tpu.memory_space<vmem>>, %arg2: memref<16x32xf32, #tpu.memory_space<vmem>>, %arg3: memref<16x1xi32, #tpu.memory_space<vmem>>, %arg4: memref<8x128xf32, #tpu.memory_space<vmem>>) attributes {dimension_semantics = [#tpu.dimension_semantics<parallel>], iteration_bounds = array<i64: 1>, scalar_prefetch = 0 : i64, scratch_operands = 0 : i64, tpu.core_type = #tpu.core_type<tc>, window_params = [{transform_indices = @transform_0, window_bounds = array<i64: 16, 32>}, {transform_indices = @transform_1, window_bounds = array<i64: 16, 32>}, {transform_indices = @transform_2, window_bounds = array<i64: 16, 1>}, {transform_indices = @transform_3, window_bounds = array<i64: 8, 128>}]} {
    %c0 = arith.constant 0 : index
    %c0_0 = arith.constant 0 : index
    %0 = vector.load %arg1[%c0, %c0_0] : memref<16x32xf32, #tpu.memory_space<vmem>>, vector<16x32xf32>
    %c0_1 = arith.constant 0 : index
    %c0_2 = arith.constant 0 : index
    %1 = vector.load %arg2[%c0_1, %c0_2] : memref<16x32xf32, #tpu.memory_space<vmem>>, vector<16x32xf32>
    %c0_3 = arith.constant 0 : index
    %c0_4 = arith.constant 0 : index
    %2 = vector.load %arg3[%c0_3, %c0_4] : memref<16x1xi32, #tpu.memory_space<vmem>>, vector<16x1xi32>
    %c16_i32 = arith.constant 16 : i32
    %3 = arith.muli %arg0, %c16_i32 : i32
    %4 = tpu.iota {dimensions = array<i32: 0>} : vector<16x1xi32>
    %5 = vector.broadcast %3 : i32 to vector<16x1xi32>
    %6 = arith.addi %5, %4 : vector<16x1xi32>
    %c16_i32_5 = arith.constant 16 : i32
    %7 = vector.broadcast %c16_i32_5 : i32 to vector<16x1xi32>
    %8 = arith.cmpi slt, %6, %7 : vector<16x1xi32>
    %9 = arith.extui %8 : vector<16x1xi1> to vector<16x1xi32>
    %10 = arith.sitofp %9 : vector<16x1xi32> to vector<16x1xf32>
    %c2_i32 = arith.constant 2 : i32
    %11 = vector.broadcast %c2_i32 : i32 to vector<16x1xi32>
    %12 = arith.shrsi %2, %11 : vector<16x1xi32>
    %c1_i32 = arith.constant 1 : i32
    %13 = vector.broadcast %c1_i32 : i32 to vector<16x1xi32>
    %14 = arith.andi %2, %13 : vector<16x1xi32>
    %15 = arith.sitofp %14 : vector<16x1xi32> to vector<16x1xf32>
    %16 = arith.mulf %15, %10 : vector<16x1xf32>
    %c1_i32_6 = arith.constant 1 : i32
    %17 = vector.broadcast %c1_i32_6 : i32 to vector<16x1xi32>
    %18 = arith.shrsi %2, %17 : vector<16x1xi32>
    %c1_i32_7 = arith.constant 1 : i32
    %19 = vector.broadcast %c1_i32_7 : i32 to vector<16x1xi32>
    %20 = arith.andi %18, %19 : vector<16x1xi32>
    %21 = arith.sitofp %20 : vector<16x1xi32> to vector<16x1xf32>
    %22 = arith.mulf %21, %10 : vector<16x1xf32>
    %cst = arith.constant 0.000000e+00 : f32
    %23 = vector.shape_cast %8 : vector<16x1xi1> to vector<16x1xi1>
    %24 = vector.broadcast %23 : vector<16x1xi1> to vector<16x32xi1>
    %25 = vector.broadcast %cst : f32 to vector<16x32xf32>
    %26 = arith.select %24, %0, %25 : vector<16x32xi1>, vector<16x32xf32>
    %cst_8 = arith.constant 0.000000e+00 : f32
    %27 = vector.shape_cast %8 : vector<16x1xi1> to vector<16x1xi1>
    %28 = vector.broadcast %27 : vector<16x1xi1> to vector<16x32xi1>
    %29 = vector.broadcast %cst_8 : f32 to vector<16x32xf32>
    %30 = arith.select %28, %1, %29 : vector<16x32xi1>, vector<16x32xf32>
    %31 = tpu.iota {dimensions = array<i32: 1>} : vector<16x32xi32>
    %32 = vector.broadcast %12 : vector<16x1xi32> to vector<16x32xi32>
    %33 = arith.cmpi eq, %31, %32 : vector<16x32xi32>
    %34 = arith.extui %33 : vector<16x32xi1> to vector<16x32xi32>
    %35 = arith.sitofp %34 : vector<16x32xi32> to vector<16x32xf32>
    %cst_9 = arith.constant dense<0xFF800000> : vector<16xf32>
    %36 = vector.multi_reduction <maximumf>, %26, %cst_9 [1] : vector<16x32xf32> to vector<16xf32>
    %37 = vector.shape_cast %36 : vector<16xf32> to vector<16x1xf32>
    %38 = vector.broadcast %37 : vector<16x1xf32> to vector<16x32xf32>
    %39 = arith.subf %26, %38 : vector<16x32xf32>
    %40 = math.exp %39 : vector<16x32xf32>
    %cst_10 = arith.constant dense<0.000000e+00> : vector<16xf32>
    %41 = vector.multi_reduction <add>, %40, %cst_10 [1] : vector<16x32xf32> to vector<16xf32>
    %42 = vector.shape_cast %41 : vector<16xf32> to vector<16x1xf32>
    %43 = math.log %42 : vector<16x1xf32>
    %44 = arith.addf %37, %43 : vector<16x1xf32>
    %45 = arith.mulf %26, %35 : vector<16x32xf32>
    %cst_11 = arith.constant dense<0.000000e+00> : vector<16xf32>
    %46 = vector.multi_reduction <add>, %45, %cst_11 [1] : vector<16x32xf32> to vector<16xf32>
    %47 = vector.shape_cast %46 : vector<16xf32> to vector<16x1xf32>
    %48 = arith.subf %44, %47 : vector<16x1xf32>
    %cst_12 = arith.constant dense<0xFF800000> : vector<16xf32>
    %49 = vector.multi_reduction <maximumf>, %30, %cst_12 [1] : vector<16x32xf32> to vector<16xf32>
    %50 = vector.shape_cast %49 : vector<16xf32> to vector<16x1xf32>
    %51 = vector.broadcast %50 : vector<16x1xf32> to vector<16x32xf32>
    %52 = arith.subf %30, %51 : vector<16x32xf32>
    %53 = math.exp %52 : vector<16x32xf32>
    %cst_13 = arith.constant dense<0.000000e+00> : vector<16xf32>
    %54 = vector.multi_reduction <add>, %53, %cst_13 [1] : vector<16x32xf32> to vector<16xf32>
    %55 = vector.shape_cast %54 : vector<16xf32> to vector<16x1xf32>
    %56 = math.log %55 : vector<16x1xf32>
    %57 = arith.addf %50, %56 : vector<16x1xf32>
    %58 = arith.mulf %30, %35 : vector<16x32xf32>
    %cst_14 = arith.constant dense<0.000000e+00> : vector<16xf32>
    %59 = vector.multi_reduction <add>, %58, %cst_14 [1] : vector<16x32xf32> to vector<16xf32>
    %60 = vector.shape_cast %59 : vector<16xf32> to vector<16x1xf32>
    %61 = arith.subf %57, %60 : vector<16x1xf32>
    %62 = arith.mulf %48, %16 : vector<16x1xf32>
    %63 = vector.shape_cast %62 : vector<16x1xf32> to vector<1x16x1xf32>
    %cst_15 = arith.constant dense<0.000000e+00> : vector<1xf32>
    %64 = vector.multi_reduction <add>, %63, %cst_15 [1, 2] : vector<1x16x1xf32> to vector<1xf32>
    %65 = vector.shape_cast %64 : vector<1xf32> to vector<1x1x1xf32>
    %66 = vector.extract %65[0, 0, 0] : f32 from vector<1x1x1xf32>
    %67 = vector.shape_cast %16 : vector<16x1xf32> to vector<1x16x1xf32>
    %cst_16 = arith.constant dense<0.000000e+00> : vector<1xf32>
    %68 = vector.multi_reduction <add>, %67, %cst_16 [1, 2] : vector<1x16x1xf32> to vector<1xf32>
    %69 = vector.shape_cast %68 : vector<1xf32> to vector<1x1x1xf32>
    %70 = vector.extract %69[0, 0, 0] : f32 from vector<1x1x1xf32>
    %71 = arith.mulf %61, %22 : vector<16x1xf32>
    %72 = vector.shape_cast %71 : vector<16x1xf32> to vector<1x16x1xf32>
    %cst_17 = arith.constant dense<0.000000e+00> : vector<1xf32>
    %73 = vector.multi_reduction <add>, %72, %cst_17 [1, 2] : vector<1x16x1xf32> to vector<1xf32>
    %74 = vector.shape_cast %73 : vector<1xf32> to vector<1x1x1xf32>
    %75 = vector.extract %74[0, 0, 0] : f32 from vector<1x1x1xf32>
    %76 = vector.shape_cast %22 : vector<16x1xf32> to vector<1x16x1xf32>
    %cst_18 = arith.constant dense<0.000000e+00> : vector<1xf32>
    %77 = vector.multi_reduction <add>, %76, %cst_18 [1, 2] : vector<1x16x1xf32> to vector<1xf32>
    %78 = vector.shape_cast %77 : vector<1xf32> to vector<1x1x1xf32>
    %79 = vector.extract %78[0, 0, 0] : f32 from vector<1x1x1xf32>
    %80 = arith.mulf %48, %10 : vector<16x1xf32>
    %81 = vector.shape_cast %80 : vector<16x1xf32> to vector<1x16x1xf32>
    %cst_19 = arith.constant dense<0.000000e+00> : vector<1xf32>
    %82 = vector.multi_reduction <add>, %81, %cst_19 [1, 2] : vector<1x16x1xf32> to vector<1xf32>
    %83 = vector.shape_cast %82 : vector<1xf32> to vector<1x1x1xf32>
    %84 = vector.extract %83[0, 0, 0] : f32 from vector<1x1x1xf32>
    %85 = tpu.iota {dimensions = array<i32: 1>} : vector<8x128xi32>
    %86 = tpu.iota {dimensions = array<i32: 0>} : vector<8x128xi32>
    %cst_20 = arith.constant 0.000000e+00 : f32
    %87 = vector.broadcast %cst_20 : f32 to vector<8x128xf32>
    %c0_i32 = arith.constant 0 : i32
    %88 = vector.broadcast %c0_i32 : i32 to vector<8x128xi32>
    %89 = arith.cmpi eq, %86, %88 : vector<8x128xi32>
    %c0_i32_21 = arith.constant 0 : i32
    %90 = vector.broadcast %c0_i32_21 : i32 to vector<8x128xi32>
    %91 = arith.cmpi eq, %85, %90 : vector<8x128xi32>
    %92 = arith.andi %89, %91 : vector<8x128xi1>
    %cst_22 = arith.constant 0.000000e+00 : f32
    %93 = vector.broadcast %66 : f32 to vector<8x128xf32>
    %94 = vector.broadcast %cst_22 : f32 to vector<8x128xf32>
    %95 = arith.select %92, %93, %94 : vector<8x128xi1>, vector<8x128xf32>
    %96 = arith.addf %87, %95 : vector<8x128xf32>
    %c0_i32_23 = arith.constant 0 : i32
    %97 = vector.broadcast %c0_i32_23 : i32 to vector<8x128xi32>
    %98 = arith.cmpi eq, %86, %97 : vector<8x128xi32>
    %c1_i32_24 = arith.constant 1 : i32
    %99 = vector.broadcast %c1_i32_24 : i32 to vector<8x128xi32>
    %100 = arith.cmpi eq, %85, %99 : vector<8x128xi32>
    %101 = arith.andi %98, %100 : vector<8x128xi1>
    %cst_25 = arith.constant 0.000000e+00 : f32
    %102 = vector.broadcast %70 : f32 to vector<8x128xf32>
    %103 = vector.broadcast %cst_25 : f32 to vector<8x128xf32>
    %104 = arith.select %101, %102, %103 : vector<8x128xi1>, vector<8x128xf32>
    %105 = arith.addf %96, %104 : vector<8x128xf32>
    %c0_i32_26 = arith.constant 0 : i32
    %106 = vector.broadcast %c0_i32_26 : i32 to vector<8x128xi32>
    %107 = arith.cmpi eq, %86, %106 : vector<8x128xi32>
    %c2_i32_27 = arith.constant 2 : i32
    %108 = vector.broadcast %c2_i32_27 : i32 to vector<8x128xi32>
    %109 = arith.cmpi eq, %85, %108 : vector<8x128xi32>
    %110 = arith.andi %107, %109 : vector<8x128xi1>
    %cst_28 = arith.constant 0.000000e+00 : f32
    %111 = vector.broadcast %75 : f32 to vector<8x128xf32>
    %112 = vector.broadcast %cst_28 : f32 to vector<8x128xf32>
    %113 = arith.select %110, %111, %112 : vector<8x128xi1>, vector<8x128xf32>
    %114 = arith.addf %105, %113 : vector<8x128xf32>
    %c0_i32_29 = arith.constant 0 : i32
    %115 = vector.broadcast %c0_i32_29 : i32 to vector<8x128xi32>
    %116 = arith.cmpi eq, %86, %115 : vector<8x128xi32>
    %c3_i32 = arith.constant 3 : i32
    %117 = vector.broadcast %c3_i32 : i32 to vector<8x128xi32>
    %118 = arith.cmpi eq, %85, %117 : vector<8x128xi32>
    %119 = arith.andi %116, %118 : vector<8x128xi1>
    %cst_30 = arith.constant 0.000000e+00 : f32
    %120 = vector.broadcast %79 : f32 to vector<8x128xf32>
    %121 = vector.broadcast %cst_30 : f32 to vector<8x128xf32>
    %122 = arith.select %119, %120, %121 : vector<8x128xi1>, vector<8x128xf32>
    %123 = arith.addf %114, %122 : vector<8x128xf32>
    %c0_i32_31 = arith.constant 0 : i32
    %124 = vector.broadcast %c0_i32_31 : i32 to vector<8x128xi32>
    %125 = arith.cmpi eq, %86, %124 : vector<8x128xi32>
    %c4_i32 = arith.constant 4 : i32
    %126 = vector.broadcast %c4_i32 : i32 to vector<8x128xi32>
    %127 = arith.cmpi eq, %85, %126 : vector<8x128xi32>
    %128 = arith.andi %125, %127 : vector<8x128xi1>
    %cst_32 = arith.constant 0.000000e+00 : f32
    %129 = vector.broadcast %84 : f32 to vector<8x128xf32>
    %130 = vector.broadcast %cst_32 : f32 to vector<8x128xf32>
    %131 = arith.select %128, %129, %130 : vector<8x128xi1>, vector<8x128xf32>
    %132 = arith.addf %123, %131 : vector<8x128xf32>
    %c0_33 = arith.constant 0 : index
    %c0_34 = arith.constant 0 : index
    %133 = vector.load %arg4[%c0_33, %c0_34] : memref<8x128xf32, #tpu.memory_space<vmem>>, vector<8x128xf32>
    tpu.vector_store %arg4[%c0_33, %c0_34], %132 {strides = array<i32>} : memref<8x128xf32, #tpu.memory_space<vmem>>, vector<8x128xf32>,
    return
  }
  func.func @transform_0(%arg0: i32) -> (i32, i32) {
    %c0_i32 = arith.constant 0 : i32
    %c0_i32_0 = arith.constant 0 : i32
    return %arg0, %c0_i32 : i32, i32
  }
  func.func @transform_1(%arg0: i32) -> (i32, i32) {
    %c0_i32 = arith.constant 0 : i32
    %c0_i32_0 = arith.constant 0 : i32
    return %arg0, %c0_i32 : i32, i32
  }
  func.func @transform_2(%arg0: i32) -> (i32, i32) {
    %c0_i32 = arith.constant 0 : i32
    %c0_i32_0 = arith.constant 0 : i32
    return %arg0, %c0_i32 : i32, i32
  }
  func.func @transform_3(%arg0: i32) -> (i32, i32) {
    %c0_i32 = arith.constant 0 : i32
    %c0_i32_0 = arith.constant 0 : i32
    return %arg0, %c0_i32 : i32, i32
  }
}

</mosaic_0001>

<bundles_post_ra>
// kernel: tpu_custom_call.1
= control target key start
LH: loop header
LB: loop body
LE: loop exit
PB: predicated region body
PF: predicated region fallthrough
CT: control target
= control target key end

     0   :  { %8 = vsyncpa [#allocation3], 0  ;;  %s467_s0 = inlined_call_operand.vmem [shape: f32[16,32], index: 0, kind: input, shape index: {}]   ;;  %s468_s1 = inlined_call_operand.hbm [shape: f32[16,32], index: 1, kind: input, shape index: {}]   ;;  %s469_s2 = inlined_call_operand.vmem [shape: s32[16,1], index: 2, kind: input, shape index: {}]   ;;  %s470_s3 = inlined_call_operand.hbm [shape: f32[8,128], index: 3, kind: output, shape index: {}]  }
   0x1   :  { %9 = vsyncpa [#allocation4], 0  ;;  %s346_s12 = smov [#allocation2]   ;;  %s298_s16 = scalar_lea.hbm %s468_s1, 256 }
   0x2   :  { %s17_s13 = sshll.u32 %s346_s12, 4  ;;  %p299_p0 = scmp.ne.s32.totalorder %s468_s1, %s298_s16  ;;  %s18_s13 = int_to_ptr.vmem [resolvable:$true] %s17_s13 }
   0x3   :  { %p302_p1 = scmp.lt.u32.totalorder %s298_s16, %s468_s1 }
   0x5   :  { %p304_p2 = pnand %p302_p1, %p299_p0 }
   0x7   :  { %307 = shalt.err (!%p304_p2)
}
   0x8   :  { %s308_s21 = scalar_lea.vmem %s18_s13, 256  ;;  %p313_p4 = scmp.lt.s32.totalorder %s18_s13, %s18_s13 }
   0x9   :  { %p309_p3 = scmp.ne.s32.totalorder %s18_s13, %s308_s21  ;;  %p314_p5 = scmp.lt.s32.totalorder %s308_s21, %s308_s21 }
   0xb   :  { %p315_p6 = por %p314_p5, %p313_p4 }
   0xd   :  { %p316_p7 = pnand %p315_p6, %p309_p3 }
   0xf   :  { %319 = shalt.err (!%p316_p7)
}
  0x10   :  { %s347_s22 = smov 128   ;;  %s348_s23 = smov 8  }
  0x11   :  { %23 = dma.hbm_to_vmem [thread:$0]  %s468_s1, 256, %s18_s13, [#allocation3], %s347_s22, %s347_s22, %s348_s23  }
  0x12   :  { %342 = dma.done.wait [#allocation3], 256  }
  0x13   :  { %343 = vsyncadd [#allocation3], 4294967040  ;;  %v349_v0 = vmov 0   ;;  %vm84_vm0 = vcmask 261120   ;;  %v29_v1 = vld [vmem:[%s467_s0] sm:$0xff]  ;;  %v30_v3 = vld [vmem:[%s467_s0 + $0x8] sm:$0xff]  ;;  %v36_v25 = vlaneseq }
  0x14   :  { %280 = vset.pattern.permute.xlu0 %v349_v0  ;;  %281 = vset.pattern.permute.xlu1 %v349_v0  ;;  %v31_v2 = vld [vmem:[#allocation2] sm:$0xff]  ;;  %v85_v4 = vsel %vm84_vm0, %v29_v1, -inf  ;;  %v32_v6 = vld [vmem:[#allocation2 + $0x8] sm:$0xff]  ;;  %v88_v7 = vsel %vm84_vm0, %v30_v3, -inf  ;;  %v350_v34 = vmov 0.0   ;;  %vm155_vm3 = vcmask 7168  }
  0x15   :  { %v119_v5 = vsel %vm84_vm0, %v31_v2, -inf  ;;  %86 = vmax.xlane.f32.xlu0 %v85_v4  ;;  %v122_v8 = vsel %vm84_vm0, %v32_v6, -inf  ;;  %v397_v9 = vld [vmem:[%s469_s2 + $0x8] sm:$0xff]  ;;  %v33_v11 = vld [vmem:[%s469_s2] sm:$0xff]  ;;  %v416_v26 = vand.u32 127, %v36_v25  ;;  %s351_s9 = smov [#allocation5]  }
  0x16   :  { %120 = vmax.xlane.f32.xlu1 %v119_v5  ;;  %v49_v10 = vshra.s32 %v397_v9, 2  ;;  %v48_v12 = vshra.s32 %v33_v11, 2  ;;  %v50_v48 = vand.u32 1, %v33_v11  ;;  %v51_v49 = vand.u32 1, %v397_v9  ;;  %s253_s10 = sshll.u32 %s351_s9, 4  ;;  %s254_s10 = int_to_ptr.vmem [resolvable:$true] %s253_s10 }
  0x17   :  { %v56_v50 = vshra.s32 %v33_v11, 1  ;;  %v57_v54 = vshra.s32 %v397_v9, 1  ;;  %vm221_vm5 = vcmp.eq.s32.totalorder %v416_v26, 0  ;;  %vm226_vm6 = vcmp.eq.s32.totalorder %v416_v26, 1  ;;  %s320_s11 = scalar_lea.vmem %s254_s10, 128  ;;  %p325_p9 = scmp.lt.s32.totalorder %s254_s10, %s254_s10 }
  0x18   :  { %v52_v51 = vcvt.s32.f32 %v50_v48  ;;  %v53_v52 = vcvt.s32.f32 %v51_v49  ;;  %vm231_vm9 = vcmp.eq.s32.totalorder %v416_v26, 2  ;;  %vm236_vm10 = vcmp.eq.s32.totalorder %v416_v26, 3  ;;  %p321_p8 = scmp.ne.s32.totalorder %s254_s10, %s320_s11  ;;  %p326_p10 = scmp.lt.s32.totalorder %s320_s11, %s320_s11 }
  0x19   :  { %89 = vmax.xlane.f32.xlu0 %v88_v7  ;;  %v58_v53 = vand.u32 1, %v56_v50  ;;  %v59_v57 = vand.u32 1, %v57_v54  ;;  %vm241_vm12 = vcmp.eq.s32.totalorder %v416_v26, 4 }
  0x1a   :  { %123 = vmax.xlane.f32.xlu1 %v122_v8  ;;  %v168_v55 = vsel %vm155_vm3, %v52_v51, 0.0  ;;  %v169_v56 = vsel %vm155_vm3, %v53_v52, 0.0  ;;  %p327_p11 = por %p326_p10, %p325_p9 }
  0x1b   :  { %v170_v58 = vadd.f32 %v169_v56, %v168_v55  ;;  %v60_v59 = vcvt.s32.f32 %v58_v53  ;;  %v61_v60 = vcvt.s32.f32 %v59_v57 }
  0x1c   :  { %p328_p12 = pnand %p327_p11, %p321_p8 }
  0x1d   :  { %v194_v61 = vsel %vm155_vm3, %v60_v59, 0.0  ;;  %v195_v62 = vsel %vm155_vm3, %v61_v60, 0.0 }
  0x1e   :  { %v196_v63 = vadd.f32 %v195_v62, %v194_v61 }
  0x2b   :  { %76 = vperm.xlu1 %281, %v49_v10  }
  0x2f   :  { %73 = vperm.xlu0 %280, %v48_v12  }
  0xa2   :  { %v403_v13 = vpop.xlane.xlu0 %86 }
  0xa3   :  { %v405_v14 = vpop.xlane.xlu1 %120  ;;  %v91_v15 = vsub.f32 %v29_v1, %v403_v13 }
  0xa4   :  { %v125_v16 = vsub.f32 %v31_v2, %v405_v14 }
  0xa5   :  { %v93_v17 = vmul.f32 1.442695, %v91_v15 }
  0xa6   :  { %v127_v18 = vmul.f32 1.442695, %v125_v16  ;;  %v409_v19 = vpop.xlane.xlu0 %89 }
  0xa7   :  { %v411_v20 = vpop.xlane.xlu1 %123  ;;  %282 = vpow2.f32 %v93_v17  ;;  %v92_v21 = vsub.f32 %v30_v3, %v409_v19 }
  0xa8   :  { %v126_v22 = vsub.f32 %v32_v6, %v411_v20  ;;  %284 = vpow2.f32 %v127_v18 }
  0xa9   :  { %v95_v23 = vmul.f32 1.442695, %v92_v21 }
  0xaa   :  { %v129_v24 = vmul.f32 1.442695, %v126_v22 }
  0xab   :  { %286 = vpow2.f32 %v95_v23  ;;  %v77_v31 = vpop.permute.xlu1 %76 }
  0xac   :  { %288 = vpow2.f32 %v129_v24  ;;  %vm79_vm2 = vcmp.eq.s32.totalorder %v416_v26, %v77_v31 }
  0xad   :  { %v263_v40 = vsel %vm79_vm2, 1.0, %v350_v34 }
  0xae   :  { %v74_v27 = vpop.permute.xlu0 %73  ;;  %v110_v42 = vmul.f32 %v263_v40, %v30_v3  ;;  %v144_v46 = vmul.f32 %v263_v40, %v32_v6 }
  0xaf   :  { %vm78_vm1 = vcmp.eq.s32.totalorder %v416_v26, %v74_v27 }
  0xb0   :  { %v262_v35 = vsel %vm78_vm1, 1.0, %v350_v34  ;;  %v114_v43 = vsel %vm84_vm0, %v110_v42, 0.0  ;;  %v148_v47 = vsel %vm84_vm0, %v144_v46, 0.0 }
  0xb1   :  { %v283_v28 = vpop.eup %282  ;;  %v109_v39 = vmul.f32 %v262_v35, %v29_v1  ;;  %v143_v44 = vmul.f32 %v262_v35, %v31_v2 }
  0xb2   :  { %v285_v29 = vpop.eup %284  ;;  %v97_v30 = vsel %vm84_vm0, %v283_v28, 0.0 }
  0xb3   :  { %98 = vadd.xlane.f32.xlu1 %v97_v30  ;;  %v131_v32 = vsel %vm84_vm0, %v285_v29, 0.0  ;;  %v111_v41 = vsel %vm84_vm0, %v109_v39, 0.0  ;;  %v145_v45 = vsel %vm84_vm0, %v143_v44, 0.0 }
  0xb5   :  { %v287_v33 = vpop.eup %286 }
  0xb6   :  { %v289_v36 = vpop.eup %288  ;;  %v100_v37 = vsel %vm84_vm0, %v287_v33, 0.0 }
  0xb7   :  { %132 = vadd.xlane.f32.xlu1 %v131_v32  ;;  %101 = vadd.xlane.f32.xlu0 %v100_v37  ;;  %v134_v38 = vsel %vm84_vm0, %v289_v36, 0.0 }
  0xbb   :  { %135 = vadd.xlane.f32.xlu1 %v134_v38 }
  0xbf   :  { %112 = vadd.xlane.f32.xlu1 %v111_v41 }
  0xc3   :  { %115 = vadd.xlane.f32.xlu1 %v114_v43 }
  0xc7   :  { %146 = vadd.xlane.f32.xlu1 %v145_v45 }
  0xcb   :  { %149 = vadd.xlane.f32.xlu1 %v148_v47 }
  0xcf   :  { %171 = vadd.xlane.f32.xlu1 %v170_v58 }
  0xd3   :  { %197 = vadd.xlane.f32.xlu1 %v196_v63 }
 0x140   :  { %v99_v0 = vpop.xlane.xlu1 %98 }
 0x141   :  { %290 = vlog2.f32 %v99_v0 }
 0x144   :  { %v133_v1 = vpop.xlane.xlu1 %132  ;;  %v102_v2 = vpop.xlane.xlu0 %101 }
 0x145   :  { %292 = vlog2.f32 %v133_v1 }
 0x146   :  { %294 = vlog2.f32 %v102_v2 }
 0x148   :  { %v136_v3 = vpop.xlane.xlu1 %135 }
 0x149   :  { %296 = vlog2.f32 %v136_v3 }
 0x14b   :  { %v291_v4 = vpop.eup %290 }
 0x14c   :  { %v104_v5 = vmul.f32 0.6931472, %v291_v4  ;;  %v113_v6 = vpop.xlane.xlu1 %112 }
 0x14e   :  { %v107_v7 = vadd.f32 %v104_v5, %v403_v13 }
 0x14f   :  { %v293_v8 = vpop.eup %292 }
 0x150   :  { %v295_v9 = vpop.eup %294  ;;  %v138_v10 = vmul.f32 0.6931472, %v293_v8  ;;  %v116_v11 = vpop.xlane.xlu1 %115  ;;  %v117_v15 = vsub.f32 %v107_v7, %v113_v6 }
 0x151   :  { %v106_v12 = vmul.f32 0.6931472, %v295_v9 }
 0x152   :  { %v141_v16 = vadd.f32 %v138_v10, %v405_v14  ;;  %v153_v23 = vmul.f32 %v117_v15, %v52_v51  ;;  %v37_v10 = vshrl.u32 %v36_v25, 7 }
 0x153   :  { %v297_v17 = vpop.eup %296  ;;  %v108_v18 = vadd.f32 %v106_v12, %v409_v19 }
 0x154   :  { %v140_v21 = vmul.f32 0.6931472, %v297_v17  ;;  %v147_v22 = vpop.xlane.xlu1 %146  ;;  %v156_v32 = vsel %vm155_vm3, %v153_v23, 0.0  ;;  %vm220_vm4 = vcmp.eq.s32.totalorder %v37_v10, 0 }
 0x155   :  { %v118_v24 = vsub.f32 %v108_v18, %v116_v11  ;;  %v151_v27 = vsub.f32 %v141_v16, %v147_v22  ;;  %vm222_vm7 = vmand %vm220_vm4, %vm221_vm5 }
 0x156   :  { %v142_v28 = vadd.f32 %v140_v21, %v411_v20  ;;  %v208_v20 = vsel %vm155_vm3, %v117_v15, 0.0  ;;  %vm227_vm8 = vmand %vm220_vm4, %vm226_vm6 }
 0x157   :  { %v154_v29 = vmul.f32 %v118_v24, %v53_v52  ;;  %v180_v30 = vmul.f32 %v151_v27, %v60_v59  ;;  %v209_v37 = vsel %vm155_vm3, %v118_v24, 0.0  ;;  %vm232_vm11 = vmand %vm220_vm4, %vm231_vm9 }
 0x158   :  { %v150_v13 = vpop.xlane.xlu1 %149  ;;  %v210_v38 = vadd.f32 %v209_v37, %v208_v20  ;;  %vm237_vm13 = vmand %vm220_vm4, %vm236_vm10 }
 0x159   :  { %v152_v31 = vsub.f32 %v142_v28, %v150_v13  ;;  %v157_v33 = vsel %vm155_vm3, %v154_v29, 0.0  ;;  %v182_v19 = vsel %vm155_vm3, %v180_v30, 0.0  ;;  %vm242_vm14 = vmand %vm220_vm4, %vm241_vm12 }
 0x15a   :  { %v158_v34 = vadd.f32 %v157_v33, %v156_v32 }
 0x15b   :  { %v181_v14 = vmul.f32 %v152_v31, %v61_v60 }
 0x15c   :  { %159 = vadd.xlane.f32.xlu0 %v158_v34  ;;  %v172_v39 = vpop.xlane.xlu1 %171 }
 0x15d   :  { %v183_v35 = vsel %vm155_vm3, %v181_v14, 0.0  ;;  %v173_v40 = vrot.slane %v172_v39, 4 }
 0x15e   :  { %v184_v36 = vadd.f32 %v183_v35, %v182_v19 }
 0x15f   :  { %v174_v42 = vadd.f32 %v173_v40, %v172_v39 }
 0x160   :  { %185 = vadd.xlane.f32.xlu0 %v184_v36  ;;  %v198_v41 = vpop.xlane.xlu1 %197 }
 0x161   :  { %v199_v43 = vrot.slane %v198_v41, 4  ;;  %v175_v44 = vrot.slane %v174_v42, 2 }
 0x163   :  { %v200_v46 = vadd.f32 %v199_v43, %v198_v41  ;;  %v176_v51 = vadd.f32 %v175_v44, %v174_v42 }
 0x164   :  { %211 = vadd.xlane.f32.xlu0 %v210_v38 }
 0x165   :  { %v201_v49 = vrot.slane %v200_v46, 2  ;;  %v177_v58 = vrot.slane %v176_v51, 1 }
 0x167   :  { %v202_v56 = vadd.f32 %v201_v49, %v200_v46  ;;  %v178_v1 = vadd.f32 %v177_v58, %v176_v51 }
 0x169   :  { %v203_v2 = vrot.slane %v202_v56, 1 }
 0x16b   :  { %v204_v7 = vadd.f32 %v203_v2, %v202_v56 }
 0x1e9   :  { %v160_v45 = vpop.xlane.xlu0 %159 }
 0x1ea   :  { %v161_v47 = vrot.slane %v160_v45, 4 }
 0x1ec   :  { %v162_v48 = vadd.f32 %v161_v47, %v160_v45 }
 0x1ed   :  { %v186_v50 = vpop.xlane.xlu0 %185 }
 0x1ee   :  { %v163_v52 = vrot.slane %v162_v48, 2  ;;  %v187_v53 = vrot.slane %v186_v50, 4 }
 0x1f0   :  { %v188_v54 = vadd.f32 %v187_v53, %v186_v50  ;;  %v164_v55 = vadd.f32 %v163_v52, %v162_v48 }
 0x1f1   :  { %v212_v57 = vpop.xlane.xlu0 %211 }
 0x1f2   :  { %v189_v59 = vrot.slane %v188_v54, 2  ;;  %v213_v60 = vrot.slane %v212_v57, 4  ;;  %v165_v61 = vrot.slane %v164_v55, 1 }
 0x1f4   :  { %v214_v62 = vadd.f32 %v213_v60, %v212_v57  ;;  %v166_v63 = vadd.f32 %v165_v61, %v164_v55  ;;  %v190_v0 = vadd.f32 %v189_v59, %v188_v54 }
 0x1f6   :  { %v215_v3 = vrot.slane %v214_v62, 2  ;;  %264 = vpush %v166_v63  ;;  %v191_v4 = vrot.slane %v190_v0, 1 }
 0x1f7   :  { %266 = vpush %v178_v1 }
 0x1f8   :  { %v216_v5 = vadd.f32 %v215_v3, %v214_v62  ;;  %v192_v6 = vadd.f32 %v191_v4, %v190_v0 }
 0x1fa   :  { %268 = vpush %v192_v6  ;;  %v217_v8 = vrot.slane %v216_v5, 1 }
 0x1fb   :  { %270 = vpush %v204_v7 }
 0x1fc   :  { %v218_v9 = vadd.f32 %v217_v8, %v216_v5 }
 0x1fe   :  { %272 = vpush %v218_v9 }
 0x227   :  { %s265_s2 = spop %264 }
 0x228   :  { %v223_v11 = vstv %s265_s2  ;;  %s267_s5 = spop %266 }
 0x229   :  { %v224_v12 = vsel %vm222_vm7, %v223_v11, 0.0  ;;  %v228_v15 = vstv %s267_s5 }
 0x22a   :  { %v229_v16 = vsel %vm227_vm8, %v228_v15, 0.0 }
 0x22b   :  { %s269_s6 = spop %268  ;;  %v230_v25 = vadd.f32 %v229_v16, %v224_v12 }
 0x22c   :  { %v233_v17 = vstv %s269_s6  ;;  %s271_s7 = spop %270 }
 0x22d   :  { %v234_v18 = vsel %vm232_vm11, %v233_v17, 0.0  ;;  %v238_v21 = vstv %s271_s7 }
 0x22e   :  { %v235_v22 = vadd.f32 %v234_v18, %v230_v25  ;;  %v239_v23 = vsel %vm237_vm13, %v238_v21, 0.0 }
 0x22f   :  { %s273_s8 = spop %272 }
 0x230   :  { %v240_v24 = vadd.f32 %v239_v23, %v235_v22  ;;  %v243_v27 = vstv %s273_s8 }
 0x231   :  { %v244_v28 = vsel %vm242_vm14, %v243_v27, 0.0 }
 0x232   :  { %v245_v29 = vadd.f32 %v244_v28, %v240_v24 }
 0x234   :  { %246 = vst [vmem:[#allocation5] sm:$0xff] %v245_v29 }
 0x235   :  { %331 = shalt.err (!%p328_p12)
}
 0x236   :  { %s332_s14 = scalar_lea.hbm %s470_s3, 128 }
 0x237   :  { %p333_p13 = scmp.ne.s32.totalorder %s470_s3, %s332_s14  ;;  %p336_p0 = scmp.lt.u32.totalorder %s332_s14, %s470_s3 }
 0x239   :  { %p338_p1 = pnand %p336_p0, %p333_p13 }
 0x23b   :  { %341 = shalt.err (!%p338_p1)
}
 0x23c   :  { %256 = dma.vmem_to_hbm [thread:$0]  %s254_s10, 128, %s470_s3, [#allocation4]  }
 0x23d   :  { %344 = dma.done.wait [#allocation4], 128  }
 0x23e   :  { %345 = vsyncadd [#allocation4], 4294967168 }
 0x23f   :  { %260 = vsyncpa [#allocation3], 1 }
 0x240   :  { %261 = vsyncpa [#allocation4], 1 }

</bundles_post_ra>
